<compile_context>
chip_gen: v5e
topology: v5e:2x2
jax: 0.10.0
libtpu: 0.0.40
codegen_flags: <defaults>
</compile_context>

<pallas_src>
import functools
import math

import jax
import jax.numpy as jnp
from jax.experimental import pallas as pl
from jax.experimental.pallas import tpu as pltpu


def _sdpa_kernel(q_ref, k_ref, v_ref, mask_ref, ctx_ref, attn_ref, *, scale):
    """Full scaled-dot-product attention for all (batch*head) slices at once."""
    q = q_ref[...]                                   # [BH, S, DK]
    k = k_ref[...]                                   # [BH, S, DK]
    v = v_ref[...]                                   # [BH, S, DV]

    # Additive mask bias: -1e9 where masked (equivalent to masked_fill_ after
    # softmax, since un-masked scores are O(1) while the bias is -1e9).
    bias = mask_ref[...] * jnp.float32(-1e9)         # [BH, S, S]

    # scores = Q @ K^T / sqrt(d_k), all heads in one batched contraction.
    scores = jnp.einsum("bqd,bkd->bqk", q, k,
                        preferred_element_type=jnp.float32) * scale + bias

    # Numerically stable softmax over the key axis.
    m = jnp.max(scores, axis=-1, keepdims=True)
    e = jnp.exp(scores - m)
    denom = jnp.sum(e, axis=-1, keepdims=True)
    attn = e * pl.reciprocal(denom, approx=True)     # EUP reciprocal (~free)

    ctx = jnp.einsum("bqk,bkd->bqd", attn, v,
                     preferred_element_type=jnp.float32)

    attn_ref[...] = attn                             # single whole-block store
    ctx_ref[...] = ctx                               # single whole-block store


def scaled_dot_product_attention(Q, K, V, attn_mask):
    """Pallas TPU ScaledDotProductAttention.

    Q, K: [B, H, S, d_k], V: [B, H, S, d_v] (float32)
    attn_mask: [B, H, S, S]; True / nonzero entries are masked out.
    Returns (context [B, H, S, d_v], attn [B, H, S, S]).
    """
    B, H, S, DK = Q.shape
    DV = V.shape[-1]
    BH = B * H

    # Fold batch*heads into one leading dim (leading-dim reshape only: free).
    q = Q.reshape(BH, S, DK).astype(jnp.float32)
    k = K.reshape(BH, S, DK).astype(jnp.float32)
    v = V.reshape(BH, S, DV).astype(jnp.float32)
    mask = attn_mask.reshape(BH, S, S).astype(jnp.float32)

    full3 = lambda shape: pl.BlockSpec(shape, lambda i: (0, 0, 0))

    ctx, attn = pl.pallas_call(
        functools.partial(_sdpa_kernel, scale=1.0 / math.sqrt(DK)),
        out_shape=(jax.ShapeDtypeStruct((BH, S, DV), jnp.float32),
                   jax.ShapeDtypeStruct((BH, S, S), jnp.float32)),
        grid=(1,),  # whole problem in one step; nothing to pipeline at this size
        in_specs=[full3((BH, S, DK)),   # Q
                  full3((BH, S, DK)),   # K
                  full3((BH, S, DV)),   # V
                  full3((BH, S, S))],   # mask (as f32, 1.0 = masked)
        out_specs=(full3((BH, S, DV)), full3((BH, S, S))),
        compiler_params=pltpu.CompilerParams(
            dimension_semantics=("arbitrary",)),
    )(q, k, v, mask)

    return ctx.reshape(B, H, S, DV), attn.reshape(B, H, S, S)


if __name__ == "__main__":
    key = jax.random.PRNGKey(0)
    B, H, S, DK, DV = 2, 4, 8, 8, 8  # consistent with the reference model (d_k = d_v = 8)

    kq, kk, kv = jax.random.split(key, 3)
    Q = jax.random.normal(kq, (B, H, S, DK), jnp.float32)
    K = jax.random.normal(kk, (B, H, S, DK), jnp.float32)
    V = jax.random.normal(kv, (B, H, S, DV), jnp.float32)

    # Causal (subsequent-position) mask, broadcast over batch and heads.
    causal = jnp.triu(jnp.ones((S, S), jnp.bool_), k=1)
    attn_mask = jnp.broadcast_to(causal[None, None], (B, H, S, S))

    context, attn = scaled_dot_product_attention(Q, K, V, attn_mask)
    context = jax.block_until_ready(context)
    attn = jax.block_until_ready(attn)

    # Pure-JAX reference (mirrors the torch module).
    scores_ref = jnp.einsum("bhqd,bhkd->bhqk", Q, K) / math.sqrt(DK)
    scores_ref = jnp.where(attn_mask, jnp.float32(-1e9), scores_ref)
    attn_ref = jax.nn.softmax(scores_ref, axis=-1)
    ctx_ref = jnp.einsum("bhqk,bhkd->bhqd", attn_ref, V)

    assert context.shape == (B, H, S, DV), context.shape
    assert attn.shape == (B, H, S, S), attn.shape
    assert bool(jnp.all(jnp.isfinite(context)))
    assert bool(jnp.all(jnp.isfinite(attn)))
    # Lenient tolerance: kernel uses the EUP approximate reciprocal in softmax.
    assert bool(jnp.allclose(attn, attn_ref, atol=5e-2, rtol=0)), "attn mismatch"
    assert bool(jnp.allclose(context, ctx_ref, atol=5e-2, rtol=0)), "context mismatch"
    print("KERNEL_OK")
</pallas_src>

<mosaic_0001>
module attributes {stable_mosaic.version = 11 : i64} {
  func.func @_sdpa_kernel(%arg0: i32, %arg1: memref<8x8x8xf32, #tpu.memory_space<vmem>>, %arg2: memref<8x8x8xf32, #tpu.memory_space<vmem>>, %arg3: memref<8x8x8xf32, #tpu.memory_space<vmem>>, %arg4: memref<8x8x8xf32, #tpu.memory_space<vmem>>, %arg5: memref<8x8x8xf32, #tpu.memory_space<vmem>>, %arg6: memref<8x8x8xf32, #tpu.memory_space<vmem>>) attributes {dimension_semantics = [#tpu.dimension_semantics<arbitrary>], iteration_bounds = array<i64: 1>, scalar_prefetch = 0 : i64, scratch_operands = 0 : i64, tpu.core_type = #tpu.core_type<tc>, window_params = [{pipeline_mode = #tpu.pipeline_mode<synchronous>, transform_indices = @transform_0, window_bounds = array<i64: 8, 8, 8>}, {pipeline_mode = #tpu.pipeline_mode<synchronous>, transform_indices = @transform_1, window_bounds = array<i64: 8, 8, 8>}, {pipeline_mode = #tpu.pipeline_mode<synchronous>, transform_indices = @transform_2, window_bounds = array<i64: 8, 8, 8>}, {pipeline_mode = #tpu.pipeline_mode<synchronous>, transform_indices = @transform_3, window_bounds = array<i64: 8, 8, 8>}, {pipeline_mode = #tpu.pipeline_mode<synchronous>, transform_indices = @transform_4, window_bounds = array<i64: 8, 8, 8>}, {pipeline_mode = #tpu.pipeline_mode<synchronous>, transform_indices = @transform_5, window_bounds = array<i64: 8, 8, 8>}]} {
    %c0 = arith.constant 0 : index
    %c0_0 = arith.constant 0 : index
    %c0_1 = arith.constant 0 : index
    %0 = vector.load %arg1[%c0, %c0_0, %c0_1] : memref<8x8x8xf32, #tpu.memory_space<vmem>>, vector<8x8x8xf32>
    %c0_2 = arith.constant 0 : index
    %c0_3 = arith.constant 0 : index
    %c0_4 = arith.constant 0 : index
    %1 = vector.load %arg2[%c0_2, %c0_3, %c0_4] : memref<8x8x8xf32, #tpu.memory_space<vmem>>, vector<8x8x8xf32>
    %c0_5 = arith.constant 0 : index
    %c0_6 = arith.constant 0 : index
    %c0_7 = arith.constant 0 : index
    %2 = vector.load %arg3[%c0_5, %c0_6, %c0_7] : memref<8x8x8xf32, #tpu.memory_space<vmem>>, vector<8x8x8xf32>
    %c0_8 = arith.constant 0 : index
    %c0_9 = arith.constant 0 : index
    %c0_10 = arith.constant 0 : index
    %3 = vector.load %arg4[%c0_8, %c0_9, %c0_10] : memref<8x8x8xf32, #tpu.memory_space<vmem>>, vector<8x8x8xf32>
    %cst = arith.constant -1.000000e+09 : f32
    %4 = vector.broadcast %cst : f32 to vector<8x8x8xf32>
    %5 = arith.mulf %3, %4 : vector<8x8x8xf32>
    "tpu.trace_start"() <{level = 10 : i32, message = "bqd,bkd->bqk"}> : () -> ()
    %cst_11 = arith.constant dense<0.000000e+00> : vector<8x8x8xf32>
    %6 = tpu.matmul %0, %1, %cst_11 {dimension_numbers = #tpu.dot_dimension_numbers<[2], [2], [1], [1], [0, 0, 0, 1, 1, 1], [0], [0]>} : vector<8x8x8xf32>, vector<8x8x8xf32>, vector<8x8x8xf32> -> vector<8x8x8xf32>
    "tpu.trace_stop"() : () -> ()
    %cst_12 = arith.constant 0.353553385 : f32
    %7 = vector.broadcast %cst_12 : f32 to vector<8x8x8xf32>
    %8 = arith.mulf %6, %7 : vector<8x8x8xf32>
    %9 = arith.addf %8, %5 : vector<8x8x8xf32>
    %cst_13 = arith.constant dense<0xFF800000> : vector<8x8xf32>
    %10 = vector.multi_reduction <maximumf>, %9, %cst_13 [2] : vector<8x8x8xf32> to vector<8x8xf32>
    %11 = vector.shape_cast %10 : vector<8x8xf32> to vector<8x8x1xf32>
    %12 = vector.broadcast %11 : vector<8x8x1xf32> to vector<8x8x8xf32>
    %13 = arith.subf %9, %12 : vector<8x8x8xf32>
    %14 = math.exp %13 : vector<8x8x8xf32>
    %cst_14 = arith.constant dense<0.000000e+00> : vector<8x8xf32>
    %15 = vector.multi_reduction <add>, %14, %cst_14 [2] : vector<8x8x8xf32> to vector<8x8xf32>
    %16 = vector.shape_cast %15 : vector<8x8xf32> to vector<8x8x1xf32>
    %17 = tpu.reciprocal %16 {approx = true} : vector<8x8x1xf32> -> vector<8x8x1xf32>
    %18 = vector.broadcast %17 : vector<8x8x1xf32> to vector<8x8x8xf32>
    %19 = arith.mulf %14, %18 : vector<8x8x8xf32>
    "tpu.trace_start"() <{level = 10 : i32, message = "bqk,bkd->bqd"}> : () -> ()
    %cst_15 = arith.constant dense<0.000000e+00> : vector<8x8x8xf32>
    %20 = tpu.matmul %19, %2, %cst_15 {dimension_numbers = #tpu.dot_dimension_numbers<[2], [1], [1], [2], [0, 0, 0, 1, 1, 2], [0], [0]>} : vector<8x8x8xf32>, vector<8x8x8xf32>, vector<8x8x8xf32> -> vector<8x8x8xf32>
    "tpu.trace_stop"() : () -> ()
    %c0_16 = arith.constant 0 : index
    %c0_17 = arith.constant 0 : index
    %c0_18 = arith.constant 0 : index
    %21 = vector.load %arg6[%c0_16, %c0_17, %c0_18] : memref<8x8x8xf32, #tpu.memory_space<vmem>>, vector<8x8x8xf32>
    tpu.vector_store %arg6[%c0_16, %c0_17, %c0_18], %19 {strides = array<i32>} : memref<8x8x8xf32, #tpu.memory_space<vmem>>, vector<8x8x8xf32>,
    %c0_19 = arith.constant 0 : index
    %c0_20 = arith.constant 0 : index
    %c0_21 = arith.constant 0 : index
    %22 = vector.load %arg5[%c0_19, %c0_20, %c0_21] : memref<8x8x8xf32, #tpu.memory_space<vmem>>, vector<8x8x8xf32>
    tpu.vector_store %arg5[%c0_19, %c0_20, %c0_21], %20 {strides = array<i32>} : memref<8x8x8xf32, #tpu.memory_space<vmem>>, vector<8x8x8xf32>,
    return
  }
  func.func @transform_0(%arg0: i32) -> (i32, i32, i32) {
    %c0_i32 = arith.constant 0 : i32
    %c0_i32_0 = arith.constant 0 : i32
    %c0_i32_1 = arith.constant 0 : i32
    %c0_i32_2 = arith.constant 0 : i32
    return %c0_i32, %c0_i32_0, %c0_i32_1 : i32, i32, i32
  }
  func.func @transform_1(%arg0: i32) -> (i32, i32, i32) {
    %c0_i32 = arith.constant 0 : i32
    %c0_i32_0 = arith.constant 0 : i32
    %c0_i32_1 = arith.constant 0 : i32
    %c0_i32_2 = arith.constant 0 : i32
    return %c0_i32, %c0_i32_0, %c0_i32_1 : i32, i32, i32
  }
  func.func @transform_2(%arg0: i32) -> (i32, i32, i32) {
    %c0_i32 = arith.constant 0 : i32
    %c0_i32_0 = arith.constant 0 : i32
    %c0_i32_1 = arith.constant 0 : i32
    %c0_i32_2 = arith.constant 0 : i32
    return %c0_i32, %c0_i32_0, %c0_i32_1 : i32, i32, i32
  }
  func.func @transform_3(%arg0: i32) -> (i32, i32, i32) {
    %c0_i32 = arith.constant 0 : i32
    %c0_i32_0 = arith.constant 0 : i32
    %c0_i32_1 = arith.constant 0 : i32
    %c0_i32_2 = arith.constant 0 : i32
    return %c0_i32, %c0_i32_0, %c0_i32_1 : i32, i32, i32
  }
  func.func @transform_4(%arg0: i32) -> (i32, i32, i32) {
    %c0_i32 = arith.constant 0 : i32
    %c0_i32_0 = arith.constant 0 : i32
    %c0_i32_1 = arith.constant 0 : i32
    %c0_i32_2 = arith.constant 0 : i32
    return %c0_i32, %c0_i32_0, %c0_i32_1 : i32, i32, i32
  }
  func.func @transform_5(%arg0: i32) -> (i32, i32, i32) {
    %c0_i32 = arith.constant 0 : i32
    %c0_i32_0 = arith.constant 0 : i32
    %c0_i32_1 = arith.constant 0 : i32
    %c0_i32_2 = arith.constant 0 : i32
    return %c0_i32, %c0_i32_0, %c0_i32_1 : i32, i32, i32
  }
}

</mosaic_0001>

<bundles_post_ra>
// kernel: tpu_custom_call.1
= control target key start
LH: loop header
LB: loop body
LE: loop exit
PB: predicated region body
PF: predicated region fallthrough
CT: control target
= control target key end

     0   :  { %11 = vsyncpa [#allocation3], 0  ;;  %s1040_s0 = inlined_call_operand.hbm [shape: f32[8,8,8], index: 0, kind: input, shape index: {}]   ;;  %s1041_s1 = inlined_call_operand.hbm [shape: f32[8,8,8], index: 1, kind: input, shape index: {}]   ;;  %s1042_s2 = inlined_call_operand.hbm [shape: f32[8,8,8], index: 2, kind: input, shape index: {}]   ;;  %s1043_s3 = inlined_call_operand.hbm [shape: f32[8,8,8], index: 3, kind: input, shape index: {}]   ;;  %s1044_s4 = inlined_call_operand.hbm [shape: f32[8,8,8], index: 4, kind: output, shape index: {0}]   ;;  %s1045_s5 = inlined_call_operand.hbm [shape: f32[8,8,8], index: 5, kind: output, shape index: {1}]  }
   0x1   :  { %12 = vsyncpa [#allocation6], 0 }
   0x2   :  { %13 = vsyncpa [#allocation9], 0 }
   0x3   :  { %14 = vsyncpa [#allocation4], 0 }
   0x4   :  { %15 = vsyncpa [#allocation12], 0  ;;  %s33_s20 = sshll.u32 %s1041_s1, 4  ;;  %s894_s21 = smov [#allocation5]   ;;  %s34_s20 = int_to_ptr.hbm [resolvable:$true] %s33_s20 }
   0x5   :  { %s35_s22 = sshll.u32 %s894_s21, 4  ;;  %s20_s25 = sshll.u32 %s1040_s0, 4  ;;  %s36_s22 = int_to_ptr.vmem [resolvable:$true] %s35_s22  ;;  %s21_s25 = int_to_ptr.hbm [resolvable:$true] %s20_s25 }
   0x6   :  { %s895_s26 = smov 128   ;;  %s896_s27 = smov 8  }
   0x7   :  { %41 = dma.hbm_to_vmem [thread:$0]  %s34_s20, 1024, %s36_s22, [#allocation6], %s895_s26, %s895_s26, %s896_s27  }
   0x8   :  { %s897_s28 = smov [#allocation2]   ;;  %s46_s1 = sshll.u32 %s1042_s2, 4  ;;  %s47_s1 = int_to_ptr.hbm [resolvable:$true] %s46_s1 }
   0x9   :  { %s22_s29 = sshll.u32 %s897_s28, 4  ;;  %s59_s8 = sshll.u32 %s1043_s3, 4  ;;  %s23_s29 = int_to_ptr.vmem [resolvable:$true] %s22_s29  ;;  %s60_s8 = int_to_ptr.hbm [resolvable:$true] %s59_s8 }
   0xa   :  { %28 = dma.hbm_to_vmem [thread:$0]  %s21_s25, 1024, %s23_s29, [#allocation3], %s895_s26, %s895_s26, %s896_s27  }
   0xb   :  { %s898_s9 = smov [#allocation7]   ;;  %s899_s11 = smov [#allocation8]  }
   0xc   :  { %s48_s10 = sshll.u32 %s898_s9, 4  ;;  %s61_s2 = sshll.u32 %s899_s11, 4  ;;  %s49_s10 = int_to_ptr.vmem [resolvable:$true] %s48_s10  ;;  %s62_s2 = int_to_ptr.vmem [resolvable:$true] %s61_s2 }
   0xd   :  { %54 = dma.hbm_to_vmem [thread:$0]  %s47_s1, 1024, %s49_s10, [#allocation6], %s895_s26, %s895_s26, %s896_s27  }
   0xe   :  { %67 = dma.hbm_to_vmem [thread:$0]  %s60_s8, 1024, %s62_s2, [#allocation9], %s895_s26, %s895_s26, %s896_s27  }
   0xf   :  { %884 = dma.done.wait [#allocation3], 1024  }
  0x10   :  { %885 = vsyncadd [#allocation3], 4294966272 }
  0x11   :  { %886 = dma.done.wait [#allocation6], 2048  }
  0x12   :  { %887 = vsyncadd [#allocation6], 4294965248 }
  0x13   :  { %888 = dma.done.wait [#allocation9], 1024  }
  0x14   :  { %889 = vsyncadd [#allocation9], 4294966272  ;;  %vm124_vm0 = vcmask 64512   ;;  %v92_v0 = vld [vmem:[#allocation5] sm:$0xff]  ;;  %v94_v1 = vld [vmem:[#allocation5 + $0x10] sm:$0xff]  ;;  %s900_s3 = smov [#allocation11]  }
  0x15   :  { %v84_v2 = vld [vmem:[#allocation2] sm:$0xff]  ;;  %676 = vmatpush.xpose.msk.msra.mxu0 %vm124_vm0, %v92_v0  ;;  %680 = vmatpush.xpose.msk.msra.mxu2 %vm124_vm0, %v94_v1  ;;  %v86_v3 = vld [vmem:[#allocation2 + $0x10] sm:$0xff]  ;;  %v93_v5 = vld [vmem:[#allocation5 + $0x8] sm:$0xff]  ;;  %s654_s12 = sshll.u32 %s900_s3, 4  ;;  %s656_s15 = sshll.u32 %s1045_s5, 4  ;;  %s655_s12 = int_to_ptr.vmem [resolvable:$true] %s654_s12  ;;  %s657_s15 = int_to_ptr.hbm [resolvable:$true] %s656_s15 }
  0x16   :  { %v98_v4 = vld [vmem:[#allocation5 + $0x30] sm:$0xff]  ;;  %678 = vmatpush.xpose.msk.msra.mxu1 %vm124_vm0, %v93_v5  ;;  %v95_v6 = vld [vmem:[#allocation5 + $0x18] sm:$0xff]  ;;  %v85_v7 = vld [vmem:[#allocation2 + $0x8] sm:$0xff]  ;;  %s901_s5 = smov [#allocation10]   ;;  %s643_s19 = sshll.u32 %s1044_s4, 4  ;;  %s644_s19 = int_to_ptr.hbm [resolvable:$true] %s643_s19 }
  0x17   :  { %682 = vmatpush.xpose.msk.msra.mxu3 %vm124_vm0, %v95_v6  ;;  %v87_v8 = vld [vmem:[#allocation2 + $0x18] sm:$0xff]  ;;  %v97_v10 = vld [vmem:[#allocation5 + $0x28] sm:$0xff]  ;;  %v96_v11 = vld [vmem:[#allocation5 + $0x20] sm:$0xff]  ;;  %s641_s16 = sshll.u32 %s901_s5, 4  ;;  %s642_s16 = int_to_ptr.vmem [resolvable:$true] %s641_s16 }
  0x18   :  { %v99_v9 = vld [vmem:[#allocation5 + $0x38] sm:$0xff]  ;;  %677 = vmatmul.msk.f32.vlgmr.msra.gmra.mxu0 %vm124_vm0, %v84_v2  ;;  %681 = vmatmul.msk.f32.vlgmr.msra.gmra.mxu2 %vm124_vm0, %v86_v3  ;;  %v90_v12 = vld [vmem:[#allocation2 + $0x30] sm:$0xff]  ;;  %v88_v13 = vld [vmem:[#allocation2 + $0x20] sm:$0xff] }
  0x19   :  { %688 = vmatpush.xpose.msk.msrb.mxu2 %vm124_vm0, %v98_v4  ;;  %679 = vmatmul.msk.f32.vlgmr.msra.gmra.mxu1 %vm124_vm0, %v85_v7  ;;  %v89_v14 = vld [vmem:[#allocation2 + $0x28] sm:$0xff]  ;;  %v91_v15 = vld [vmem:[#allocation2 + $0x38] sm:$0xff]  ;;  %v108_v16 = vld [vmem:[#allocation8] sm:$0xff] }
  0x1a   :  { %683 = vmatmul.msk.f32.vlgmr.msra.gmra.mxu3 %vm124_vm0, %v87_v8  ;;  %686 = vmatpush.xpose.msk.msrb.mxu1 %vm124_vm0, %v97_v10  ;;  %v116_v17 = vmul.f32 -1e+09, %v108_v16  ;;  %v109_v19 = vld [vmem:[#allocation8 + $0x8] sm:$0xff]  ;;  %v110_v22 = vld [vmem:[#allocation8 + $0x10] sm:$0xff]  ;;  %v111_v29 = vld [vmem:[#allocation8 + $0x18] sm:$0xff] }
  0x1b   :  { %690 = vmatpush.xpose.msk.msrb.mxu3 %vm124_vm0, %v99_v9  ;;  %684 = vmatpush.xpose.msk.msrb.mxu0 %vm124_vm0, %v96_v11  ;;  %v117_v25 = vmul.f32 -1e+09, %v109_v19  ;;  %v118_v27 = vmul.f32 -1e+09, %v110_v22  ;;  %v113_v33 = vld [vmem:[#allocation8 + $0x28] sm:$0xff]  ;;  %v114_v38 = vld [vmem:[#allocation8 + $0x30] sm:$0xff] }
  0x1c   :  { %v119_v37 = vmul.f32 -1e+09, %v111_v29  ;;  %v121_v42 = vmul.f32 -1e+09, %v113_v33  ;;  %v122_v44 = vmul.f32 -1e+09, %v114_v38 }
  0x1d   :  { %v115_v45 = vld [vmem:[#allocation8 + $0x38] sm:$0xff]  ;;  %v112_v46 = vld [vmem:[#allocation8 + $0x20] sm:$0xff] }
  0x1e   :  { %v123_v52 = vmul.f32 -1e+09, %v115_v45  ;;  %v120_v53 = vmul.f32 -1e+09, %v112_v46  ;;  %v106_v45 = vld [vmem:[#allocation7 + $0x30] sm:$0xff]  ;;  %v107_v46 = vld [vmem:[#allocation7 + $0x38] sm:$0xff] }
  0x20   :  { %689 = vmatmul.msk.f32.vlgmr.msrb.gmra.mxu2 %vm124_vm0, %v90_v12  ;;  %685 = vmatmul.msk.f32.vlgmr.msrb.gmra.mxu0 %vm124_vm0, %v88_v13 }
  0x21   :  { %687 = vmatmul.msk.f32.vlgmr.msrb.gmra.mxu1 %vm124_vm0, %v89_v14 }
  0x22   :  { %691 = vmatmul.msk.f32.vlgmr.msrb.gmra.mxu3 %vm124_vm0, %v91_v15 }
  0x95   :  { %v148_v18 = vpop.f32.mrf.mxu0 }
  0x96   :  { %v333_v20 = vmul.f32 0.35355338, %v148_v18  ;;  %v174_v21 = vpop.f32.mrf.mxu1 }
  0x97   :  { %v334_v24 = vmul.f32 0.35355338, %v174_v21 }
  0x98   :  { %v341_v23 = vadd.f32 %v333_v20, %v116_v17 }
  0x99   :  { %v342_v31 = vadd.f32 %v334_v24, %v117_v25 }
  0x9a   :  { %v349_v26 = vsel %vm124_vm0, %v341_v23, -inf }
  0x9b   :  { %v200_v28 = vpop.f32.mrf.mxu2  ;;  %350 = vmax.xlane.f32.xlu1 %v349_v26  ;;  %v352_v40 = vsel %vm124_vm0, %v342_v31, -inf }
  0x9c   :  { %v335_v30 = vmul.f32 0.35355338, %v200_v28 }
  0x9d   :  { %v226_v32 = vpop.f32.mrf.mxu3  ;;  %v252_v48 = vpop.f32.mrf.mxu0 }
  0x9e   :  { %v343_v34 = vadd.f32 %v335_v30, %v118_v27  ;;  %v336_v35 = vmul.f32 0.35355338, %v226_v32  ;;  %v278_v36 = vpop.f32.mrf.mxu1  ;;  %v337_v57 = vmul.f32 0.35355338, %v252_v48 }
  0x9f   :  { %v338_v41 = vmul.f32 0.35355338, %v278_v36 }
  0xa0   :  { %v355_v39 = vsel %vm124_vm0, %v343_v34, -inf  ;;  %v344_v43 = vadd.f32 %v336_v35, %v119_v37  ;;  %v345_v61 = vadd.f32 %v337_v57, %v120_v53 }
  0xa1   :  { %356 = vmax.xlane.f32.xlu0 %v355_v39  ;;  %v346_v50 = vadd.f32 %v338_v41, %v121_v42  ;;  %v102_v41 = vld [vmem:[#allocation7 + $0x10] sm:$0xff]  ;;  %v103_v42 = vld [vmem:[#allocation7 + $0x18] sm:$0xff] }
  0xa2   :  { %v358_v54 = vsel %vm124_vm0, %v344_v43, -inf  ;;  %v361_v63 = vsel %vm124_vm0, %v345_v61, -inf  ;;  %501 = vmatpush.msra.mxu2 %v102_v41  ;;  %524 = vmatpush.msra.mxu3 %v103_v42 }
  0xa3   :  { %v304_v47 = vpop.f32.mrf.mxu2  ;;  %353 = vmax.xlane.f32.xlu1 %v352_v40  ;;  %v364_v59 = vsel %vm124_vm0, %v346_v50, -inf  ;;  %v100_v40 = vld [vmem:[#allocation7] sm:$0xff] }
  0xa4   :  { %v339_v49 = vmul.f32 0.35355338, %v304_v47  ;;  %455 = vmatpush.msra.mxu0 %v100_v40  ;;  %v104_v47 = vld [vmem:[#allocation7 + $0x20] sm:$0xff]  ;;  %593 = vmatpush.msrb.mxu2 %v106_v45 }
  0xa5   :  { %v330_v51 = vpop.f32.mrf.mxu3  ;;  %616 = vmatpush.msrb.mxu3 %v107_v46 }
  0xa6   :  { %v347_v55 = vadd.f32 %v339_v49, %v122_v44  ;;  %v340_v56 = vmul.f32 0.35355338, %v330_v51  ;;  %547 = vmatpush.msrb.mxu0 %v104_v47  ;;  %v105_v51 = vld [vmem:[#allocation7 + $0x28] sm:$0xff] }
  0xa8   :  { %v367_v58 = vsel %vm124_vm0, %v347_v55, -inf  ;;  %v348_v60 = vadd.f32 %v340_v56, %v123_v52 }
  0xa9   :  { %359 = vmax.xlane.f32.xlu0 %v358_v54  ;;  %368 = vmax.xlane.f32.xlu2 %v367_v58 }
  0xaa   :  { %v370_v62 = vsel %vm124_vm0, %v348_v60, -inf }
  0xab   :  { %365 = vmax.xlane.f32.xlu1 %v364_v59 }
  0xb1   :  { %371 = vmax.xlane.f32.xlu2 %v370_v62  ;;  %362 = vmax.xlane.f32.xlu0 %v361_v63 }
 0x10e   :  { %v351_v0 = vpop.xlane.xlu1 %350 }
 0x10f   :  { %v373_v1 = vsub.f32 %v341_v23, %v351_v0 }
 0x111   :  { %v381_v2 = vmul.f32 1.442695, %v373_v1 }
 0x113   :  { %708 = vpow2.f32 %v381_v2 }
 0x114   :  { %v357_v3 = vpop.xlane.xlu0 %356 }
 0x115   :  { %v375_v4 = vsub.f32 %v343_v34, %v357_v3 }
 0x116   :  { %v354_v5 = vpop.xlane.xlu1 %353 }
 0x117   :  { %v385_v6 = vmul.f32 1.442695, %v375_v4  ;;  %v374_v7 = vsub.f32 %v342_v31, %v354_v5 }
 0x119   :  { %v980_v8 = vpop.eup %708  ;;  %710 = vpow2.f32 %v385_v6  ;;  %v383_v10 = vmul.f32 1.442695, %v374_v7 }
 0x11a   :  { %v397_v9 = vsel %vm124_vm0, %v980_v8, 0.0 }
 0x11b   :  { %398 = vadd.xlane.f32.xlu1 %v397_v9  ;;  %712 = vpow2.f32 %v383_v10 }
 0x11c   :  { %v360_v11 = vpop.xlane.xlu0 %359  ;;  %v369_v12 = vpop.xlane.xlu2 %368 }
 0x11d   :  { %v376_v13 = vsub.f32 %v344_v43, %v360_v11  ;;  %v379_v16 = vsub.f32 %v347_v55, %v369_v12  ;;  %v101_v43 = vld [vmem:[#allocation7 + $0x8] sm:$0xff] }
 0x11e   :  { %v366_v19 = vpop.xlane.xlu1 %365  ;;  %478 = vmatpush.msra.mxu1 %v101_v43 }
 0x11f   :  { %v984_v14 = vpop.eup %710  ;;  %v387_v15 = vmul.f32 1.442695, %v376_v13  ;;  %v393_v18 = vmul.f32 1.442695, %v379_v16  ;;  %v378_v26 = vsub.f32 %v346_v50, %v366_v19 }
 0x120   :  { %v403_v17 = vsel %vm124_vm0, %v984_v14, 0.0  ;;  %570 = vmatpush.msrb.mxu1 %v105_v51 }
 0x121   :  { %714 = vpow2.f32 %v387_v15  ;;  %404 = vadd.xlane.f32.xlu2 %v403_v17  ;;  %v713_v22 = vpop.eup %712  ;;  %v391_v31 = vmul.f32 1.442695, %v378_v26 }
 0x122   :  { %716 = vpow2.f32 %v393_v18  ;;  %v400_v29 = vsel %vm124_vm0, %v713_v22, 0.0 }
 0x124   :  { %v372_v20 = vpop.xlane.xlu2 %371  ;;  %v363_v21 = vpop.xlane.xlu0 %362 }
 0x125   :  { %v380_v23 = vsub.f32 %v348_v60, %v372_v20  ;;  %v377_v24 = vsub.f32 %v345_v61, %v363_v21 }
 0x127   :  { %v715_v25 = vpop.eup %714  ;;  %v395_v27 = vmul.f32 1.442695, %v380_v23  ;;  %v389_v28 = vmul.f32 1.442695, %v377_v24 }
 0x128   :  { %v406_v30 = vsel %vm124_vm0, %v715_v25, 0.0  ;;  %v990_v32 = vpop.eup %716 }
 0x129   :  { %718 = vpow2.f32 %v395_v27  ;;  %401 = vadd.xlane.f32.xlu2 %v400_v29  ;;  %407 = vadd.xlane.f32.xlu0 %v406_v30  ;;  %v415_v36 = vsel %vm124_vm0, %v990_v32, 0.0 }
 0x12a   :  { %720 = vpow2.f32 %v389_v28 }
 0x12b   :  { %722 = vpow2.f32 %v391_v31 }
 0x12f   :  { %v719_v33 = vpop.eup %718 }
 0x130   :  { %v721_v34 = vpop.eup %720  ;;  %v418_v35 = vsel %vm124_vm0, %v719_v33, 0.0 }
 0x131   :  { %419 = vadd.xlane.f32.xlu1 %v418_v35  ;;  %416 = vadd.xlane.f32.xlu0 %v415_v36  ;;  %v409_v37 = vsel %vm124_vm0, %v721_v34, 0.0  ;;  %v996_v38 = vpop.eup %722 }
 0x132   :  { %410 = vadd.xlane.f32.xlu2 %v409_v37  ;;  %v412_v39 = vsel %vm124_vm0, %v996_v38, 0.0 }
 0x139   :  { %413 = vadd.xlane.f32.xlu0 %v412_v39 }
 0x18e   :  { %v399_v44 = vpop.xlane.xlu1 %398 }
 0x18f   :  { %724 = vrcp.f32 %v399_v44 }
 0x194   :  { %v405_v48 = vpop.xlane.xlu2 %404 }
 0x195   :  { %v725_v49 = vpop.eup %724  ;;  %726 = vrcp.f32 %v405_v48 }
 0x196   :  { %v429_v50 = vmul.f32 %v725_v49, %v980_v8 }
 0x198   :  { %621 = vst.msk [vmem:[#allocation11] sm:$0xff] %vm124_vm0, %v429_v50  ;;  %692 = vmatmul.msk.f32.vlgmr.msra.gmra.mxu0 %vm124_vm0, %v429_v50 }
 0x19b   :  { %v727_v52 = vpop.eup %726 }
 0x19c   :  { %v431_v53 = vmul.f32 %v727_v52, %v984_v14  ;;  %v402_v54 = vpop.xlane.xlu2 %401  ;;  %v408_v55 = vpop.xlane.xlu0 %407 }
 0x19d   :  { %728 = vrcp.f32 %v402_v54 }
 0x19e   :  { %623 = vst.msk [vmem:[#allocation11 + $0x10] sm:$0xff] %vm124_vm0, %v431_v53  ;;  %730 = vrcp.f32 %v408_v55  ;;  %694 = vmatmul.msk.f32.vlgmr.msra.gmra.mxu2 %vm124_vm0, %v431_v53 }
 0x1a3   :  { %v729_v56 = vpop.eup %728 }
 0x1a4   :  { %v731_v57 = vpop.eup %730  ;;  %v430_v58 = vmul.f32 %v729_v56, %v713_v22  ;;  %v420_v59 = vpop.xlane.xlu1 %419 }
 0x1a5   :  { %v417_v60 = vpop.xlane.xlu0 %416  ;;  %v432_v61 = vmul.f32 %v731_v57, %v715_v25  ;;  %732 = vrcp.f32 %v420_v59  ;;  %v411_v62 = vpop.xlane.xlu2 %410 }
 0x1a6   :  { %622 = vst.msk [vmem:[#allocation11 + $0x8] sm:$0xff] %vm124_vm0, %v430_v58  ;;  %734 = vrcp.f32 %v411_v62  ;;  %693 = vmatmul.msk.f32.vlgmr.msra.gmra.mxu1 %vm124_vm0, %v430_v58 }
 0x1a7   :  { %624 = vst.msk [vmem:[#allocation11 + $0x18] sm:$0xff] %vm124_vm0, %v432_v61  ;;  %736 = vrcp.f32 %v417_v60  ;;  %695 = vmatmul.msk.f32.vlgmr.msra.gmra.mxu3 %vm124_vm0, %v432_v61 }
 0x1ab   :  { %v733_v63 = vpop.eup %732 }
 0x1ac   :  { %v735_v0 = vpop.eup %734  ;;  %v436_v1 = vmul.f32 %v733_v63, %v719_v33 }
 0x1ad   :  { %v414_v2 = vpop.xlane.xlu0 %413  ;;  %v737_v3 = vpop.eup %736  ;;  %v433_v4 = vmul.f32 %v735_v0, %v721_v34 }
 0x1ae   :  { %738 = vrcp.f32 %v414_v2  ;;  %628 = vst.msk [vmem:[#allocation11 + $0x38] sm:$0xff] %vm124_vm0, %v436_v1  ;;  %v435_v5 = vmul.f32 %v737_v3, %v990_v32 }
 0x1af   :  { %625 = vst.msk [vmem:[#allocation11 + $0x20] sm:$0xff] %vm124_vm0, %v433_v4  ;;  %696 = vmatmul.msk.f32.vlgmr.msrb.gmra.mxu0 %vm124_vm0, %v433_v4  ;;  %699 = vmatmul.msk.f32.vlgmr.msrb.gmra.mxu3 %vm124_vm0, %v436_v1 }
 0x1b0   :  { %627 = vst.msk [vmem:[#allocation11 + $0x30] sm:$0xff] %vm124_vm0, %v435_v5  ;;  %698 = vmatmul.msk.f32.vlgmr.msrb.gmra.mxu2 %vm124_vm0, %v435_v5 }
 0x1b4   :  { %v739_v6 = vpop.eup %738 }
 0x1b5   :  { %v434_v7 = vmul.f32 %v739_v6, %v996_v38 }
 0x1b7   :  { %626 = vst.msk [vmem:[#allocation11 + $0x28] sm:$0xff] %vm124_vm0, %v434_v7  ;;  %697 = vmatmul.msk.f32.vlgmr.msrb.gmra.mxu1 %vm124_vm0, %v434_v7 }
 0x1b8   :  { %662 = dma.vmem_to_hbm [thread:$0]  %s655_s12, 1024, %s657_s15, [#allocation12], %s895_s26, %s895_s26, %s896_s27  }
 0x215   :  { %v457_v8 = vpop.f32.mrf.mxu0 }
 0x216   :  { %629 = vst.msk [vmem:[#allocation10] sm:$0xff] %vm124_vm0, %v457_v8 }
 0x221   :  { %v503_v9 = vpop.f32.mrf.mxu2 }
 0x222   :  { %631 = vst.msk [vmem:[#allocation10 + $0x10] sm:$0xff] %vm124_vm0, %v503_v9 }
 0x223   :  { %v480_v10 = vpop.f32.mrf.mxu1 }
 0x224   :  { %630 = vst.msk [vmem:[#allocation10 + $0x8] sm:$0xff] %vm124_vm0, %v480_v10 }
 0x22a   :  { %v526_v11 = vpop.f32.mrf.mxu3 }
 0x22b   :  { %632 = vst.msk [vmem:[#allocation10 + $0x18] sm:$0xff] %vm124_vm0, %v526_v11 }
 0x22c   :  { %v549_v12 = vpop.f32.mrf.mxu0 }
 0x22d   :  { %633 = vst.msk [vmem:[#allocation10 + $0x20] sm:$0xff] %vm124_vm0, %v549_v12 }
 0x232   :  { %v618_v13 = vpop.f32.mrf.mxu3 }
 0x233   :  { %v595_v14 = vpop.f32.mrf.mxu2  ;;  %636 = vst.msk [vmem:[#allocation10 + $0x38] sm:$0xff] %vm124_vm0, %v618_v13 }
 0x234   :  { %v572_v15 = vpop.f32.mrf.mxu1  ;;  %635 = vst.msk [vmem:[#allocation10 + $0x30] sm:$0xff] %vm124_vm0, %v595_v14 }
 0x235   :  { %634 = vst.msk [vmem:[#allocation10 + $0x28] sm:$0xff] %vm124_vm0, %v572_v15 }
 0x236   :  { %649 = dma.vmem_to_hbm [thread:$0]  %s642_s16, 1024, %s644_s19, [#allocation4], %s895_s26, %s895_s26, %s896_s27  }
 0x237   :  { %890 = dma.done.wait [#allocation4], 1024  }
 0x238   :  { %891 = vsyncadd [#allocation4], 4294966272 }
 0x239   :  { %892 = dma.done.wait [#allocation12], 1024  }
 0x23a   :  { %893 = vsyncadd [#allocation12], 4294966272 }
 0x23b   :  { %671 = vsyncpa [#allocation3], 1 }
 0x23c   :  { %672 = vsyncpa [#allocation6], 1 }
 0x23d   :  { %673 = vsyncpa [#allocation9], 1 }
 0x23e   :  { %674 = vsyncpa [#allocation4], 1 }
 0x23f   :  { %675 = vsyncpa [#allocation12], 1 }

</bundles_post_ra>
